<compile_context>
chip_gen: v5e
topology: v5e:2x2
jax: 0.10.0
libtpu: 0.0.40
codegen_flags: <defaults>
</compile_context>

<pallas_src>
import numpy as np
import jax
import jax.numpy as jnp
from jax.experimental import pallas as pl
from jax.experimental.pallas import tpu as pltpu

HIDDEN = 32   # A3TGCN2 out_channels
MID = 16      # linear1 out features


# ----------------------------------------------------------------------------
# Pallas kernel: fused A3TGCN2 + tanh + linear1 + tanh + linear2 (one batch item)
# ----------------------------------------------------------------------------
def a3tgcn_kernel(x_ref,       # VMEM (1, T*N, F)   all periods of one batch, row = t*N + n
                  a_ref,       # VMEM (T*N, T*N)    kron(I_T, A_hat)
                  p_ref,       # VMEM (N, T*N)      kron(softmax(attention), I_N)
                  wc_ref,      # VMEM (F, 64)       [Wcz | Wch]
                  wl_ref,      # VMEM (64, 64)      blockdiag(Wlz, Wlh) (H0 = 0 -> top half only)
                  bcl_ref,     # VMEM (2, 64)       row0 = [bcz|bch], row1 = [blz|blh]
                  w1_ref,      # VMEM (32, 16)      linear1
                  w2_ref,      # VMEM (16, P)       linear2
                  bh_ref,      # VMEM (1, 16+P)     [b1 | b2]
                  out_ref):    # VMEM (1, N, P)
    x = x_ref[0]                                                            # (T*N, F)

    # GCNConv for BOTH gates and ALL periods at once:
    #   A_hat X_t W + b  ==  kron(I_T, A_hat) @ (X @ [Wcz|Wch]) + [bcz|bch]
    xw = jnp.dot(x, wc_ref[...], preferred_element_type=jnp.float32)        # (T*N, 64)
    axw = jnp.dot(a_ref[...], xw, preferred_element_type=jnp.float32)       # (T*N, 64)
    axw = axw + bcl_ref[0:1, :]

    # GRU gate linears; with H0 = 0 the reset gate is an exact no-op and only
    # the conv half of the 2*32 -> 32 weights contributes (block-diag fusion).
    g = jnp.dot(axw, wl_ref[...], preferred_element_type=jnp.float32) + bcl_ref[1:2, :]
    z = jax.nn.sigmoid(g[:, :HIDDEN])
    h_tilde = jnp.tanh(g[:, HIDDEN:])
    hp = (1.0 - z) * h_tilde                                                # (T*N, 32)

    # Attention-weighted sum over periods as one matmul:
    #   P[n, t*N + m] = probs[t] * delta(n, m)  ->  H_accum = P @ hp
    acc = jnp.dot(p_ref[...], hp, preferred_element_type=jnp.float32)       # (N, 32)

    # Head: tanh -> linear1 -> tanh -> (dropout = eval identity) -> linear2
    h = jnp.tanh(acc)
    h = jnp.tanh(jnp.dot(h, w1_ref[...], preferred_element_type=jnp.float32)
                 + bh_ref[:, :MID])
    # TODO(synk): nn.Dropout is eval-mode identity here; training mode would need
    # pltpu.prng_seed / pltpu.prng_random_bits.
    out = jnp.dot(h, w2_ref[...], preferred_element_type=jnp.float32) + bh_ref[:, MID:]
    out_ref[0] = out.astype(out_ref.dtype)


# ----------------------------------------------------------------------------
# Wrapper
# ----------------------------------------------------------------------------
def traffic_a3tgcn_single_shot(x, a_hat, params):
    """x: (B, N, F, T) float32 (PyTorch A3TGCN2 layout), a_hat: (N, N) float32."""
    B, N, F, T = x.shape
    P_out = params["w2"].shape[1]

    # (B, N, F, T) -> (B, T, N, F) -> (B, T*N, F): row index = t*N + n.
    x_flat = jnp.transpose(x, (0, 3, 1, 2)).reshape(B, T * N, F)

    probs = jax.nn.softmax(params["attention"])                       # (T,)
    a_block = jnp.kron(jnp.eye(T, dtype=jnp.float32), a_hat)          # (T*N, T*N)
    p_mat = jnp.kron(probs[None, :], jnp.eye(N, dtype=jnp.float32))   # (N, T*N)

    # Fused / packed weights.
    wc = jnp.concatenate([params["wcz"], params["wch"]], axis=1)      # (F, 64)
    zeros = jnp.zeros((HIDDEN, HIDDEN), jnp.float32)
    wl = jnp.concatenate(
        [jnp.concatenate([params["wlz"], zeros], axis=1),
         jnp.concatenate([zeros, params["wlh"]], axis=1)], axis=0)    # (64, 64)
    bcl = jnp.concatenate(
        [jnp.concatenate([params["bcz"], params["bch"]], axis=1),
         jnp.concatenate([params["blz"], params["blh"]], axis=1)], axis=0)  # (2, 64)
    bhead = jnp.concatenate([params["b1"], params["b2"]], axis=1)     # (1, 16+P)

    def full(shape):
        n = len(shape)
        return pl.BlockSpec(shape, lambda b, _n=n: (0,) * _n)

    grid_spec = pltpu.PrefetchScalarGridSpec(
        num_scalar_prefetch=0,
        grid=(B,),
        in_specs=[
            pl.BlockSpec((1, T * N, F), lambda b: (b, 0, 0)),
            full((T * N, T * N)),
            full((N, T * N)),
            full((F, 2 * HIDDEN)),
            full((2 * HIDDEN, 2 * HIDDEN)),
            full((2, 2 * HIDDEN)),
            full((HIDDEN, MID)),
            full((MID, P_out)),
            full((1, MID + P_out)),
        ],
        out_specs=pl.BlockSpec((1, N, P_out), lambda b: (b, 0, 0)),
    )

    return pl.pallas_call(
        a3tgcn_kernel,
        out_shape=jax.ShapeDtypeStruct((B, N, P_out), jnp.float32),
        grid_spec=grid_spec,
        compiler_params=pltpu.CompilerParams(
            dimension_semantics=("parallel",),
            vmem_limit_bytes=32 * 1024 * 1024),
    )(x_flat, a_block, p_mat, wc, wl, bcl,
      params["w1"], params["w2"], bhead)


# ----------------------------------------------------------------------------
# Glue: GCN-normalized dense adjacency, parameter init, pure-JAX reference
# ----------------------------------------------------------------------------
def gcn_norm_dense(edge_index, num_nodes):
    """Dense A_hat = D^-1/2 (A + I) D^-1/2 matching PyG gcn_norm (edge_weight=1)."""
    src, dst = edge_index[0], edge_index[1]
    A = jnp.zeros((num_nodes, num_nodes), jnp.float32)
    A = A.at[dst, src].add(1.0)                            # messages flow src -> dst
    A = A + jnp.eye(num_nodes, dtype=jnp.float32)          # add self loops (fill=1.0)
    deg = A.sum(axis=1)
    dinv = jnp.where(deg > 0.0, jax.lax.rsqrt(deg), 0.0)
    return dinv[:, None] * A * dinv[None, :]


def init_params(key, node_features, periods_in, periods_out):
    keys = jax.random.split(key, 16)
    F = node_features

    def glorot(k, shape):
        lim = np.sqrt(6.0 / (shape[0] + shape[1]))
        return jax.random.uniform(k, shape, jnp.float32, -lim, lim)

    def bias(k, n):
        lim = 1.0 / np.sqrt(n)
        return jax.random.uniform(k, (1, n), jnp.float32, -lim, lim)

    # linear_z / linear_h are 2*32 -> 32; since H0 == 0 only the top 32 rows
    # (the conv-output half of the concat) ever contribute -> slice exactly.
    wlz_full = glorot(keys[4], (2 * HIDDEN, HIDDEN))
    wlh_full = glorot(keys[5], (2 * HIDDEN, HIDDEN))

    return dict(
        # GCNConv weights stored as (in, out) = torch weight.T ; PyG zero-inits conv bias.
        wcz=glorot(keys[0], (F, HIDDEN)), bcz=jnp.zeros((1, HIDDEN), jnp.float32),
        wch=glorot(keys[1], (F, HIDDEN)), bch=jnp.zeros((1, HIDDEN), jnp.float32),
        wlz=wlz_full[:HIDDEN], blz=bias(keys[6], HIDDEN),
        wlh=wlh_full[:HIDDEN], blh=bias(keys[7], HIDDEN),
        w1=glorot(keys[8], (HIDDEN, MID)), b1=bias(keys[9], MID),
        w2=glorot(keys[10], (MID, periods_out)), b2=bias(keys[11], periods_out),
        attention=jax.random.uniform(keys[12], (periods_in,), jnp.float32),  # torch uniform_
    )


def reference_forward(x, a_hat, params):
    """Pure-JAX reference of the same forward (for correctness check)."""
    B, N, F, T = x.shape
    probs = jax.nn.softmax(params["attention"])
    acc = jnp.zeros((B, N, HIDDEN), jnp.float32)
    for t in range(T):
        xt = x[..., t]                                      # (B, N, F)
        ax = jnp.einsum("ij,bjf->bif", a_hat, xt)
        cz = ax @ params["wcz"] + params["bcz"]
        ch = ax @ params["wch"] + params["bch"]
        z = jax.nn.sigmoid(cz @ params["wlz"] + params["blz"])
        ht = jnp.tanh(ch @ params["wlh"] + params["blh"])
        acc = acc + probs[t] * ((1.0 - z) * ht)
    h = jnp.tanh(acc)
    h = jnp.tanh(h @ params["w1"] + params["b1"])
    return h @ params["w2"] + params["b2"]


if __name__ == "__main__":
    B, N, F, T, P_out = 2, 16, 4, 8, 4        # batch, nodes, node_features, periods_in/out
    key = jax.random.PRNGKey(0)
    k_x, k_p = jax.random.split(key)

    # Node features for T time steps: (batch, nodes, features, periods) — PyTorch layout.
    x = jax.random.normal(k_x, (B, N, F, T), jnp.float32)

    # Deterministic ring graph (both directions).
    idx = np.arange(N)
    src = np.concatenate([idx, (idx + 1) % N])
    dst = np.concatenate([(idx + 1) % N, idx])
    edge_index = jnp.asarray(np.stack([src, dst]), dtype=jnp.int32)      # (2, 2N)
    edge_features = jnp.ones((edge_index.shape[1], 1), jnp.float32)      # unused (as in PyTorch forward)

    a_hat = gcn_norm_dense(edge_index, N)
    params = init_params(k_p, F, T, P_out)

    out = traffic_a3tgcn_single_shot(x, a_hat, params)
    out = jax.block_until_ready(out)

    ref = reference_forward(x, a_hat, params)
    np.testing.assert_allclose(np.asarray(out), np.asarray(ref), rtol=1e-3, atol=1e-3)
    assert out.shape == (B, N, P_out)
    print("KERNEL_OK")
</pallas_src>

<mosaic_0001>
module attributes {stable_mosaic.version = 11 : i64} {
  func.func @a3tgcn_kernel(%arg0: i32, %arg1: memref<1x128x4xf32, #tpu.memory_space<vmem>>, %arg2: memref<128x128xf32, #tpu.memory_space<vmem>>, %arg3: memref<16x128xf32, #tpu.memory_space<vmem>>, %arg4: memref<4x64xf32, #tpu.memory_space<vmem>>, %arg5: memref<64x64xf32, #tpu.memory_space<vmem>>, %arg6: memref<2x64xf32, #tpu.memory_space<vmem>>, %arg7: memref<32x16xf32, #tpu.memory_space<vmem>>, %arg8: memref<16x4xf32, #tpu.memory_space<vmem>>, %arg9: memref<1x20xf32, #tpu.memory_space<vmem>>, %arg10: memref<1x16x4xf32, #tpu.memory_space<vmem>>) attributes {dimension_semantics = [#tpu.dimension_semantics<parallel>], iteration_bounds = array<i64: 2>, scalar_prefetch = 0 : i64, scratch_operands = 0 : i64, tpu.core_type = #tpu.core_type<tc>, window_params = [{transform_indices = @transform_0, window_bounds = array<i64: 1, 128, 4>}, {pipeline_mode = #tpu.pipeline_mode<synchronous>, transform_indices = @transform_1, window_bounds = array<i64: 128, 128>}, {pipeline_mode = #tpu.pipeline_mode<synchronous>, transform_indices = @transform_2, window_bounds = array<i64: 16, 128>}, {pipeline_mode = #tpu.pipeline_mode<synchronous>, transform_indices = @transform_3, window_bounds = array<i64: 4, 64>}, {pipeline_mode = #tpu.pipeline_mode<synchronous>, transform_indices = @transform_4, window_bounds = array<i64: 64, 64>}, {pipeline_mode = #tpu.pipeline_mode<synchronous>, transform_indices = @transform_5, window_bounds = array<i64: 2, 64>}, {pipeline_mode = #tpu.pipeline_mode<synchronous>, transform_indices = @transform_6, window_bounds = array<i64: 32, 16>}, {pipeline_mode = #tpu.pipeline_mode<synchronous>, transform_indices = @transform_7, window_bounds = array<i64: 16, 4>}, {pipeline_mode = #tpu.pipeline_mode<synchronous>, transform_indices = @transform_8, window_bounds = array<i64: 1, 20>}, {transform_indices = @transform_9, window_bounds = array<i64: 1, 16, 4>}]} {
    %c0 = arith.constant 0 : index
    %c0_0 = arith.constant 0 : index
    %c0_1 = arith.constant 0 : index
    %0 = vector.load %arg1[%c0, %c0_0, %c0_1] : memref<1x128x4xf32, #tpu.memory_space<vmem>>, vector<1x128x4xf32>
    %1 = vector.shape_cast %0 : vector<1x128x4xf32> to vector<128x4xf32>
    %c0_2 = arith.constant 0 : index
    %c0_3 = arith.constant 0 : index
    %2 = vector.load %arg4[%c0_2, %c0_3] : memref<4x64xf32, #tpu.memory_space<vmem>>, vector<4x64xf32>
    %cst = arith.constant dense<0.000000e+00> : vector<128x64xf32>
    %3 = tpu.matmul %1, %2, %cst {dimension_numbers = #tpu.dot_dimension_numbers<[1], [0], [0], [1], [0, 0, 1, 1], [], []>} : vector<128x4xf32>, vector<4x64xf32>, vector<128x64xf32> -> vector<128x64xf32>
    %c0_4 = arith.constant 0 : index
    %c0_5 = arith.constant 0 : index
    %4 = vector.load %arg2[%c0_4, %c0_5] : memref<128x128xf32, #tpu.memory_space<vmem>>, vector<128x128xf32>
    %cst_6 = arith.constant dense<0.000000e+00> : vector<128x64xf32>
    %5 = tpu.matmul %4, %3, %cst_6 {dimension_numbers = #tpu.dot_dimension_numbers<[1], [0], [0], [1], [0, 0, 1, 1], [], []>} : vector<128x128xf32>, vector<128x64xf32>, vector<128x64xf32> -> vector<128x64xf32>
    %c0_7 = arith.constant 0 : index
    %c0_8 = arith.constant 0 : index
    %6 = vector.load %arg6[%c0_7, %c0_8] : memref<2x64xf32, #tpu.memory_space<vmem>>, vector<1x64xf32>
    %7 = vector.broadcast %6 : vector<1x64xf32> to vector<128x64xf32>
    %8 = arith.addf %5, %7 : vector<128x64xf32>
    %c0_9 = arith.constant 0 : index
    %c0_10 = arith.constant 0 : index
    %9 = vector.load %arg5[%c0_9, %c0_10] : memref<64x64xf32, #tpu.memory_space<vmem>>, vector<64x64xf32>
    %cst_11 = arith.constant dense<0.000000e+00> : vector<128x64xf32>
    %10 = tpu.matmul %8, %9, %cst_11 {dimension_numbers = #tpu.dot_dimension_numbers<[1], [0], [0], [1], [0, 0, 1, 1], [], []>} : vector<128x64xf32>, vector<64x64xf32>, vector<128x64xf32> -> vector<128x64xf32>
    %c1 = arith.constant 1 : index
    %c0_12 = arith.constant 0 : index
    %11 = vector.load %arg6[%c1, %c0_12] : memref<2x64xf32, #tpu.memory_space<vmem>>, vector<1x64xf32>
    %12 = vector.broadcast %11 : vector<1x64xf32> to vector<128x64xf32>
    %13 = arith.addf %10, %12 : vector<128x64xf32>
    %14 = vector.extract_strided_slice %13 {offsets = [0, 0], sizes = [128, 32], strides = [1, 1]} : vector<128x64xf32> to vector<128x32xf32>
    %15 = arith.negf %14 : vector<128x32xf32>
    %16 = math.exp %15 : vector<128x32xf32>
    %cst_13 = arith.constant 1.000000e+00 : f32
    %17 = vector.broadcast %cst_13 : f32 to vector<128x32xf32>
    %18 = arith.addf %17, %16 : vector<128x32xf32>
    %19 = arith.divf %17, %18 : vector<128x32xf32>
    %20 = vector.extract_strided_slice %13 {offsets = [0, 32], sizes = [128, 32], strides = [1, 1]} : vector<128x64xf32> to vector<128x32xf32>
    %21 = math.tanh %20 : vector<128x32xf32>
    %cst_14 = arith.constant 1.000000e+00 : f32
    %22 = vector.broadcast %cst_14 : f32 to vector<128x32xf32>
    %23 = arith.subf %22, %19 : vector<128x32xf32>
    %24 = arith.mulf %23, %21 : vector<128x32xf32>
    %c0_15 = arith.constant 0 : index
    %c0_16 = arith.constant 0 : index
    %25 = vector.load %arg3[%c0_15, %c0_16] : memref<16x128xf32, #tpu.memory_space<vmem>>, vector<16x128xf32>
    %cst_17 = arith.constant dense<0.000000e+00> : vector<16x32xf32>
    %26 = tpu.matmul %25, %24, %cst_17 {dimension_numbers = #tpu.dot_dimension_numbers<[1], [0], [0], [1], [0, 0, 1, 1], [], []>} : vector<16x128xf32>, vector<128x32xf32>, vector<16x32xf32> -> vector<16x32xf32>
    %27 = math.tanh %26 : vector<16x32xf32>
    %c0_18 = arith.constant 0 : index
    %c0_19 = arith.constant 0 : index
    %28 = vector.load %arg7[%c0_18, %c0_19] : memref<32x16xf32, #tpu.memory_space<vmem>>, vector<32x16xf32>
    %cst_20 = arith.constant dense<0.000000e+00> : vector<16x16xf32>
    %29 = tpu.matmul %27, %28, %cst_20 {dimension_numbers = #tpu.dot_dimension_numbers<[1], [0], [0], [1], [0, 0, 1, 1], [], []>} : vector<16x32xf32>, vector<32x16xf32>, vector<16x16xf32> -> vector<16x16xf32>
    %c0_21 = arith.constant 0 : index
    %c0_22 = arith.constant 0 : index
    %30 = vector.load %arg9[%c0_21, %c0_22] : memref<1x20xf32, #tpu.memory_space<vmem>>, vector<1x16xf32>
    %31 = vector.broadcast %30 : vector<1x16xf32> to vector<16x16xf32>
    %32 = arith.addf %29, %31 : vector<16x16xf32>
    %33 = math.tanh %32 : vector<16x16xf32>
    %c0_23 = arith.constant 0 : index
    %c0_24 = arith.constant 0 : index
    %34 = vector.load %arg8[%c0_23, %c0_24] : memref<16x4xf32, #tpu.memory_space<vmem>>, vector<16x4xf32>
    %cst_25 = arith.constant dense<0.000000e+00> : vector<16x4xf32>
    %35 = tpu.matmul %33, %34, %cst_25 {dimension_numbers = #tpu.dot_dimension_numbers<[1], [0], [0], [1], [0, 0, 1, 1], [], []>} : vector<16x16xf32>, vector<16x4xf32>, vector<16x4xf32> -> vector<16x4xf32>
    %c0_26 = arith.constant 0 : index
    %c16 = arith.constant 16 : index
    %36 = vector.load %arg9[%c0_26, %c16] : memref<1x20xf32, #tpu.memory_space<vmem>>, vector<1x4xf32>
    %37 = vector.broadcast %36 : vector<1x4xf32> to vector<16x4xf32>
    %38 = arith.addf %35, %37 : vector<16x4xf32>
    %c0_27 = arith.constant 0 : index
    %c0_28 = arith.constant 0 : index
    %c0_29 = arith.constant 0 : index
    %39 = vector.load %arg10[%c0_27, %c0_28, %c0_29] : memref<1x16x4xf32, #tpu.memory_space<vmem>>, vector<1x16x4xf32>
    %40 = vector.shape_cast %39 : vector<1x16x4xf32> to vector<16x4xf32>
    %41 = vector.shape_cast %38 : vector<16x4xf32> to vector<1x16x4xf32>
    tpu.vector_store %arg10[%c0_27, %c0_28, %c0_29], %41 {strides = array<i32>} : memref<1x16x4xf32, #tpu.memory_space<vmem>>, vector<1x16x4xf32>,
    return
  }
  func.func @transform_0(%arg0: i32) -> (i32, i32, i32) {
    %c0_i32 = arith.constant 0 : i32
    %c0_i32_0 = arith.constant 0 : i32
    %c0_i32_1 = arith.constant 0 : i32
    return %arg0, %c0_i32, %c0_i32_0 : i32, i32, i32
  }
  func.func @transform_1(%arg0: i32) -> (i32, i32) {
    %c0_i32 = arith.constant 0 : i32
    %c0_i32_0 = arith.constant 0 : i32
    %c0_i32_1 = arith.constant 0 : i32
    return %c0_i32, %c0_i32_0 : i32, i32
  }
  func.func @transform_2(%arg0: i32) -> (i32, i32) {
    %c0_i32 = arith.constant 0 : i32
    %c0_i32_0 = arith.constant 0 : i32
    %c0_i32_1 = arith.constant 0 : i32
    return %c0_i32, %c0_i32_0 : i32, i32
  }
  func.func @transform_3(%arg0: i32) -> (i32, i32) {
    %c0_i32 = arith.constant 0 : i32
    %c0_i32_0 = arith.constant 0 : i32
    %c0_i32_1 = arith.constant 0 : i32
    return %c0_i32, %c0_i32_0 : i32, i32
  }
  func.func @transform_4(%arg0: i32) -> (i32, i32) {
    %c0_i32 = arith.constant 0 : i32
    %c0_i32_0 = arith.constant 0 : i32
    %c0_i32_1 = arith.constant 0 : i32
    return %c0_i32, %c0_i32_0 : i32, i32
  }
  func.func @transform_5(%arg0: i32) -> (i32, i32) {
    %c0_i32 = arith.constant 0 : i32
    %c0_i32_0 = arith.constant 0 : i32
    %c0_i32_1 = arith.constant 0 : i32
    return %c0_i32, %c0_i32_0 : i32, i32
  }
  func.func @transform_6(%arg0: i32) -> (i32, i32) {
    %c0_i32 = arith.constant 0 : i32
    %c0_i32_0 = arith.constant 0 : i32
    %c0_i32_1 = arith.constant 0 : i32
    return %c0_i32, %c0_i32_0 : i32, i32
  }
  func.func @transform_7(%arg0: i32) -> (i32, i32) {
    %c0_i32 = arith.constant 0 : i32
    %c0_i32_0 = arith.constant 0 : i32
    %c0_i32_1 = arith.constant 0 : i32
    return %c0_i32, %c0_i32_0 : i32, i32
  }
  func.func @transform_8(%arg0: i32) -> (i32, i32) {
    %c0_i32 = arith.constant 0 : i32
    %c0_i32_0 = arith.constant 0 : i32
    %c0_i32_1 = arith.constant 0 : i32
    return %c0_i32, %c0_i32_0 : i32, i32
  }
  func.func @transform_9(%arg0: i32) -> (i32, i32, i32) {
    %c0_i32 = arith.constant 0 : i32
    %c0_i32_0 = arith.constant 0 : i32
    %c0_i32_1 = arith.constant 0 : i32
    return %arg0, %c0_i32, %c0_i32_0 : i32, i32, i32
  }
}

</mosaic_0001>

<bundles_post_ra>
// kernel: tpu_custom_call.1
= control target key start
LH: loop header
LB: loop body
LE: loop exit
PB: predicated region body
PF: predicated region fallthrough
CT: control target
= control target key end

     0   :  { %s1509_s30 = smov 0   ;;  %s2196_s0 = inlined_call_operand.vmem [shape: f32[2,128,4], index: 0, kind: input, shape index: {}]   ;;  %s2197_s1 = inlined_call_operand.vmem [shape: f32[128,128], index: 1, kind: input, shape index: {}]   ;;  %s2198_s2 = inlined_call_operand.vmem [shape: f32[16,128], index: 2, kind: input, shape index: {}]   ;;  %s2199_s3 = inlined_call_operand.vmem [shape: f32[4,64], index: 3, kind: input, shape index: {}]   ;;  %s2200_s4 = inlined_call_operand.vmem [shape: f32[64,64], index: 4, kind: input, shape index: {}]   ;;  %s2201_s5 = inlined_call_operand.vmem [shape: f32[2,64], index: 5, kind: input, shape index: {}]   ;;  %s2202_s6 = inlined_call_operand.vmem [shape: f32[32,16], index: 6, kind: input, shape index: {}]   ;;  %s2203_s7 = inlined_call_operand.vmem [shape: f32[16,4], index: 7, kind: input, shape index: {}]   ;;  %s2204_s8 = inlined_call_operand.vmem [shape: f32[1,20], index: 8, kind: input, shape index: {}]   ;;  %s2205_s9 = inlined_call_operand.vmem [shape: f32[2,16,4], index: 9, kind: output, shape index: {}]  }
   0x1 LB: > { %s1250_s10 = sadd.s32 4294967295, %s1455_s30   ;;  %p1254_p0 = scmp.ge.s32.totalorder %s1455_s30, 1  ;;  %s1455_s30 = sphi %s1509_s30, %s19_s30  }
   0x2   : > { %p287_p1 = scmp.lt.s32.totalorder %s1455_s30, 3 }
   0x4   : > { %p288_p2 = pnand %p1254_p0, %p287_p1 }
   0x5   : > { %p323_p3 = scmp.lt.s32.totalorder (!%p288_p2), %s1250_s10, 1  ;;  %s1457_s12 = smov (!%p288_p2), 96  }
   0x6   : > { %291 = sbr.rel (%p288_p2) target bundleno = 1254 (0x4e6), region = 56  ;;  %s1458_s29 = smov (!%p288_p2), 112  }
   0xb   : > { %v349_v0 = vld [vmem:[%s2199_s3] sm:$0xf]  ;;  %vm399_vm0 = vcmask 1043456   ;;  %s2247_s10 = smov (!%p323_p3, %s1250_s10), 1  ;;  %vm2206_vm1 = vcmask 31744   ;;  %v469_v34 = vld [vmem:[%s2197_s1 + $0x8] sm:$0xff] }
   0xc   : > { %1259 = vmatpush.msk.msra.mxu0 %vm399_vm0, %v349_v0  ;;  %s1314_s13 = sshll.u32 %s2247_s10, 7  ;;  %v468_v33 = vld [vmem:[%s2197_s1] sm:$0xff]  ;;  %v470_v35 = vld [vmem:[%s2197_s1 + $0x10] sm:$0xff]  ;;  %v471_v36 = vld [vmem:[%s2197_s1 + $0x18] sm:$0xff]  ;;  %vm561_vm2 = vcmask 523264  }
   0xd   : > { %s1526_s16 = scalar_lea.vmem %s2196_s0, %s1314_s13  ;;  %v472_v37 = vld [vmem:[%s2197_s1 + $0x20] sm:$0xff]  ;;  %v473_v38 = vld [vmem:[%s2197_s1 + $0x28] sm:$0xff]  ;;  %v474_v39 = vld [vmem:[%s2197_s1 + $0x30] sm:$0xff]  ;;  %s1315_s13 = sshll.u32 %s2247_s10, 4 }
   0xe   : > { %v333_v1 = vld [vmem:[%s1526_s16] sm:$0xff]  ;;  %v334_v2 = vld [vmem:[%s1526_s16 + $0x8] sm:$0xff]  ;;  %v335_v3 = vld [vmem:[%s1526_s16 + $0x10] sm:$0xff] }
   0xf   : > { %1260 = vmatmul.msk.f32.vlgmr.msra.gmra.mxu0 %vm2206_vm1, %v333_v1  ;;  %v336_v4 = vld [vmem:[%s1526_s16 + $0x18] sm:$0xff]  ;;  %v337_v5 = vld [vmem:[%s1526_s16 + $0x20] sm:$0xff]  ;;  %v338_v6 = vld [vmem:[%s1526_s16 + $0x28] sm:$0xff] }
  0x10   : > { %v339_v7 = vld [vmem:[%s1526_s16 + $0x30] sm:$0xff]  ;;  %v340_v8 = vld [vmem:[%s1526_s16 + $0x38] sm:$0xff]  ;;  %v341_v9 = vld [vmem:[%s1526_s16 + $0x40] sm:$0xff] }
  0x11   : > { %v342_v10 = vld [vmem:[%s1526_s16 + $0x48] sm:$0xff]  ;;  %v343_v11 = vld [vmem:[%s1526_s16 + $0x50] sm:$0xff]  ;;  %v344_v12 = vld [vmem:[%s1526_s16 + $0x58] sm:$0xff] }
  0x12   : > { %v345_v13 = vld [vmem:[%s1526_s16 + $0x60] sm:$0xff]  ;;  %v346_v14 = vld [vmem:[%s1526_s16 + $0x68] sm:$0xff]  ;;  %v347_v15 = vld [vmem:[%s1526_s16 + $0x70] sm:$0xff] }
  0x13   : > { %v348_v16 = vld [vmem:[%s1526_s16 + $0x78] sm:$0xff]  ;;  %v480_v41 = vld [vmem:[%s2197_s1 + $0x60] sm:$0xff]  ;;  %v557_v43 = vld [vmem:[%s2200_s4 + $0x30] sm:$0xff]  ;;  %s332_s16 = scalar_lea.vmem %s2205_s9, %s1315_s13 }
  0x14   : > { %v475_v40 = vld [vmem:[%s2197_s1 + $0x38] sm:$0xff]  ;;  %v556_v44 = vld [vmem:[%s2200_s4 + $0x28] sm:$0xff]  ;;  %v476_v45 = vld [vmem:[%s2197_s1 + $0x40] sm:$0xff] }
  0x15   : > { %v558_v42 = vld [vmem:[%s2200_s4 + $0x38] sm:$0xff]  ;;  %v555_v46 = vld [vmem:[%s2200_s4 + $0x20] sm:$0xff]  ;;  %v481_v47 = vld [vmem:[%s2197_s1 + $0x68] sm:$0xff] }
  0x16   : > { %618 = vmatpush.msra.mxu2 %v558_v42  ;;  %v554_v48 = vld [vmem:[%s2200_s4 + $0x18] sm:$0xff]  ;;  %v553_v49 = vld [vmem:[%s2200_s4 + $0x10] sm:$0xff]  ;;  %v477_v50 = vld [vmem:[%s2197_s1 + $0x48] sm:$0xff] }
  0x17   : > { %1261 = vmatmul.msk.f32.gmra.mxu0 %vm2206_vm1, %v334_v2  ;;  %v482_v51 = vld [vmem:[%s2197_s1 + $0x70] sm:$0xff]  ;;  %v483_v53 = vld [vmem:[%s2197_s1 + $0x78] sm:$0xff]  ;;  %v552_v55 = vld [vmem:[%s2200_s4 + $0x8] sm:$0xff] }
  0x18   : > { %619 = vmatpush.msra.mxu2 %v557_v43  ;;  %v478_v52 = vld [vmem:[%s2197_s1 + $0x50] sm:$0xff]  ;;  %v479_v54 = vld [vmem:[%s2197_s1 + $0x58] sm:$0xff]  ;;  %v551_v56 = vld [vmem:[%s2200_s4] sm:$0xff] }
  0x19   : > { %v1342_v57 = vld [vmem:[%s2201_s5] ss:$0 sm:$0xff] }
  0x1a   : > { %620 = vmatpush.msra.mxu2 %v556_v44 }
  0x1c   : > { %621 = vmatpush.msra.mxu2 %v555_v46 }
  0x1e   : > { %622 = vmatpush.msra.mxu2 %v554_v48 }
  0x1f   : > { %1262 = vmatmul.msk.f32.gmra.mxu0 %vm2206_vm1, %v335_v3 }
  0x20   : > { %623 = vmatpush.msra.mxu2 %v553_v49 }
  0x22   : > { %624 = vmatpush.msra.mxu2 %v552_v55 }
  0x24   : > { %625 = vmatpush.msra.mxu2 %v551_v56 }
  0x27   : > { %1263 = vmatmul.msk.f32.gmra.mxu0 %vm2206_vm1, %v336_v4 }
  0x2f   : > { %1264 = vmatmul.msk.f32.gmra.mxu0 %vm2206_vm1, %v337_v5 }
  0x37   : > { %1265 = vmatmul.msk.f32.gmra.mxu0 %vm2206_vm1, %v338_v6 }
  0x3f   : > { %1266 = vmatmul.msk.f32.gmra.mxu0 %vm2206_vm1, %v339_v7 }
  0x47   : > { %1267 = vmatmul.msk.f32.gmra.mxu0 %vm2206_vm1, %v340_v8 }
  0x4f   : > { %1268 = vmatmul.msk.f32.gmra.mxu0 %vm2206_vm1, %v341_v9 }
  0x57   : > { %1269 = vmatmul.msk.f32.gmra.mxu0 %vm2206_vm1, %v342_v10 }
  0x5f   : > { %1270 = vmatmul.msk.f32.gmra.mxu0 %vm2206_vm1, %v343_v11 }
  0x67   : > { %1271 = vmatmul.msk.f32.gmra.mxu0 %vm2206_vm1, %v344_v12 }
  0x6f   : > { %1272 = vmatmul.msk.f32.gmra.mxu0 %vm2206_vm1, %v345_v13 }
  0x77   : > { %1273 = vmatmul.msk.f32.gmra.mxu0 %vm2206_vm1, %v346_v14 }
  0x7f   : > { %1274 = vmatmul.msk.f32.gmra.mxu0 %vm2206_vm1, %v347_v15 }
  0x87   : > { %1275 = vmatmul.msk.f32.gmra.mxu0 %vm2206_vm1, %v348_v16 }
  0x8c   : > { %v420_v17 = vpop.f32.mrf.mxu0 }
  0x94   : > { %v423_v18 = vpop.f32.mrf.mxu0 }
  0x9c   : > { %v426_v19 = vpop.f32.mrf.mxu0 }
  0xa4   : > { %v429_v20 = vpop.f32.mrf.mxu0 }
  0xac   : > { %v432_v21 = vpop.f32.mrf.mxu0 }
  0xb4   : > { %v435_v22 = vpop.f32.mrf.mxu0 }
  0xbc   : > { %v438_v23 = vpop.f32.mrf.mxu0 }
  0xc4   : > { %v441_v24 = vpop.f32.mrf.mxu0 }
  0xcc   : > { %v444_v25 = vpop.f32.mrf.mxu0 }
  0xd4   : > { %v447_v26 = vpop.f32.mrf.mxu0 }
  0xdc   : > { %v450_v27 = vpop.f32.mrf.mxu0 }
  0xe4   : > { %v453_v28 = vpop.f32.mrf.mxu0 }
  0xec   : > { %v456_v29 = vpop.f32.mrf.mxu0 }
  0xf4   : > { %v459_v30 = vpop.f32.mrf.mxu0 }
  0xfc   : > { %v462_v31 = vpop.f32.mrf.mxu0 }
 0x104   : > { %v465_v32 = vpop.f32.mrf.mxu0 }
 0x105   : > { %486 = vmatpush.msra.mxu1 %v465_v32  ;;  %1316 = vmatpush.msra.mxu3 %v465_v32 }
 0x107   : > { %487 = vmatpush.msra.mxu1 %v462_v31  ;;  %1317 = vmatpush.msra.mxu3 %v462_v31 }
 0x109   : > { %488 = vmatpush.msra.mxu1 %v459_v30  ;;  %1318 = vmatpush.msra.mxu3 %v459_v30 }
 0x10b   : > { %489 = vmatpush.msra.mxu1 %v456_v29  ;;  %1319 = vmatpush.msra.mxu3 %v456_v29 }
 0x10d   : > { %490 = vmatpush.msra.mxu1 %v453_v28  ;;  %1320 = vmatpush.msra.mxu3 %v453_v28 }
 0x10f   : > { %491 = vmatpush.msra.mxu1 %v450_v27  ;;  %1321 = vmatpush.msra.mxu3 %v450_v27 }
 0x111   : > { %492 = vmatpush.msra.mxu1 %v447_v26  ;;  %1322 = vmatpush.msra.mxu3 %v447_v26 }
 0x113   : > { %493 = vmatpush.msra.mxu1 %v444_v25  ;;  %1323 = vmatpush.msra.mxu3 %v444_v25 }
 0x115   : > { %494 = vmatpush.msra.mxu1 %v441_v24  ;;  %1324 = vmatpush.msra.mxu3 %v441_v24 }
 0x117   : > { %495 = vmatpush.msra.mxu1 %v438_v23  ;;  %1325 = vmatpush.msra.mxu3 %v438_v23 }
 0x119   : > { %496 = vmatpush.msra.mxu1 %v435_v22  ;;  %1326 = vmatpush.msra.mxu3 %v435_v22 }
 0x11b   : > { %497 = vmatpush.msra.mxu1 %v432_v21  ;;  %1327 = vmatpush.msra.mxu3 %v432_v21 }
 0x11d   : > { %498 = vmatpush.msra.mxu1 %v429_v20  ;;  %1328 = vmatpush.msra.mxu3 %v429_v20 }
 0x11f   : > { %499 = vmatpush.msra.mxu1 %v426_v19  ;;  %1329 = vmatpush.msra.mxu3 %v426_v19 }
 0x121   : > { %500 = vmatpush.msra.mxu1 %v423_v18  ;;  %1330 = vmatpush.msra.mxu3 %v423_v18 }
 0x123   : > { %501 = vmatpush.msra.mxu1 %v420_v17  ;;  %1331 = vmatpush.msra.mxu3 %v420_v17 }
 0x124   : > { %502 = vmatmul.f32.vlgmr.msra.gmra.mxu1 %v468_v33  ;;  %538 = vmatmul.f32.vlgmr.msra.gmra.mxu3 %v480_v41 }
 0x12c   : > { %505 = vmatmul.f32.gmra.mxu1 %v469_v34  ;;  %541 = vmatmul.f32.gmra.mxu3 %v481_v47 }
 0x134   : > { %508 = vmatmul.f32.gmra.mxu1 %v470_v35  ;;  %544 = vmatmul.f32.gmra.mxu3 %v482_v51 }
 0x13c   : > { %511 = vmatmul.f32.gmra.mxu1 %v471_v36  ;;  %547 = vmatmul.f32.gmra.mxu3 %v483_v53  ;;  %v1658_v36 = vld [vmem:[%s2201_s5 + $0x1] ss:$0 sm:$0xff] }
 0x144   : > { %514 = vmatmul.f32.gmra.mxu1 %v472_v37 }
 0x14c   : > { %517 = vmatmul.f32.gmra.mxu1 %v473_v38 }
 0x154   : > { %520 = vmatmul.f32.gmra.mxu1 %v474_v39 }
 0x15c   : > { %523 = vmatmul.f32.gmra.mxu1 %v475_v40 }
 0x164   : > { %526 = vmatmul.f32.gmra.mxu1 %v476_v45 }
 0x16c   : > { %529 = vmatmul.f32.gmra.mxu1 %v477_v50 }
 0x174   : > { %532 = vmatmul.f32.gmra.mxu1 %v478_v52 }
 0x17c   : > { %535 = vmatmul.f32.gmra.mxu1 %v479_v54 }
 0x1a1   : > { %v503_v58 = vpop.f32.mrf.mxu1 }
 0x1a2   : > { %v504_v59 = vadd.f32 %v1342_v57, %v503_v58 }
 0x1a4   : > { %1276 = vmatmul.msk.f32.vlgmr.msra.gmra.mxu2 %vm561_vm2, %v504_v59 }
 0x1a7   : > { %v539_v16 = vpop.f32.mrf.mxu3 }
 0x1a8   : > { %v540_v19 = vadd.f32 %v1342_v57, %v539_v16 }
 0x1a9   : > { %v506_v60 = vpop.f32.mrf.mxu1 }
 0x1aa   : > { %v507_v61 = vadd.f32 %v1342_v57, %v506_v60 }
 0x1ac   : > { %1277 = vmatmul.msk.f32.gmra.mxu2 %vm561_vm2, %v507_v61 }
 0x1af   : > { %v542_v20 = vpop.f32.mrf.mxu3 }
 0x1b0   : > { %v543_v21 = vadd.f32 %v1342_v57, %v542_v20 }
 0x1b1   : > { %v509_v62 = vpop.f32.mrf.mxu1 }
 0x1b2   : > { %v510_v63 = vadd.f32 %v1342_v57, %v509_v62 }
 0x1b4   : > { %1278 = vmatmul.msk.f32.gmra.mxu2 %vm561_vm2, %v510_v63 }
 0x1b7   : > { %v545_v22 = vpop.f32.mrf.mxu3 }
 0x1b8   : > { %v546_v23 = vadd.f32 %v1342_v57, %v545_v22 }
 0x1b9   : > { %v512_v0 = vpop.f32.mrf.mxu1 }
 0x1ba   : > { %v513_v1 = vadd.f32 %v1342_v57, %v512_v0 }
 0x1bc   : > { %1279 = vmatmul.msk.f32.gmra.mxu2 %vm561_vm2, %v513_v1 }
 0x1bf   : > { %v548_v24 = vpop.f32.mrf.mxu3 }
 0x1c0   : > { %v549_v25 = vadd.f32 %v1342_v57, %v548_v24 }
 0x1c1   : > { %v515_v2 = vpop.f32.mrf.mxu1 }
 0x1c2   : > { %v516_v3 = vadd.f32 %v1342_v57, %v515_v2 }
 0x1c4   : > { %1280 = vmatmul.msk.f32.gmra.mxu2 %vm561_vm2, %v516_v3 }
 0x1c9   : > { %v518_v4 = vpop.f32.mrf.mxu1 }
 0x1ca   : > { %v519_v5 = vadd.f32 %v1342_v57, %v518_v4 }
 0x1cc   : > { %1281 = vmatmul.msk.f32.gmra.mxu2 %vm561_vm2, %v519_v5 }
 0x1d1   : > { %v521_v6 = vpop.f32.mrf.mxu1 }
 0x1d2   : > { %v522_v7 = vadd.f32 %v1342_v57, %v521_v6 }
 0x1d4   : > { %1282 = vmatmul.msk.f32.gmra.mxu2 %vm561_vm2, %v522_v7 }
 0x1d9   : > { %v524_v8 = vpop.f32.mrf.mxu1 }
 0x1da   : > { %v525_v9 = vadd.f32 %v1342_v57, %v524_v8 }
 0x1dc   : > { %1283 = vmatmul.msk.f32.gmra.mxu2 %vm561_vm2, %v525_v9 }
 0x1e1   : > { %v527_v10 = vpop.f32.mrf.mxu1 }
 0x1e2   : > { %v528_v11 = vadd.f32 %v1342_v57, %v527_v10 }
 0x1e4   : > { %1284 = vmatmul.msk.f32.gmra.mxu2 %vm561_vm2, %v528_v11 }
 0x1e9   : > { %v530_v12 = vpop.f32.mrf.mxu1 }
 0x1ea   : > { %v531_v13 = vadd.f32 %v1342_v57, %v530_v12 }
 0x1ec   : > { %1285 = vmatmul.msk.f32.gmra.mxu2 %vm561_vm2, %v531_v13 }
 0x1f1   : > { %v533_v14 = vpop.f32.mrf.mxu1 }
 0x1f2   : > { %v534_v15 = vadd.f32 %v1342_v57, %v533_v14 }
 0x1f4   : > { %1286 = vmatmul.msk.f32.gmra.mxu2 %vm561_vm2, %v534_v15 }
 0x1f9   : > { %v536_v17 = vpop.f32.mrf.mxu1 }
 0x1fa   : > { %v537_v18 = vadd.f32 %v1342_v57, %v536_v17 }
 0x1fc   : > { %1287 = vmatmul.msk.f32.gmra.mxu2 %vm561_vm2, %v537_v18 }
 0x204   : > { %1288 = vmatmul.msk.f32.gmra.mxu2 %vm561_vm2, %v540_v19 }
 0x20c   : > { %1289 = vmatmul.msk.f32.gmra.mxu2 %vm561_vm2, %v543_v21 }
 0x214   : > { %1290 = vmatmul.msk.f32.gmra.mxu2 %vm561_vm2, %v546_v23 }
 0x21c   : > { %1291 = vmatmul.msk.f32.gmra.mxu2 %vm561_vm2, %v549_v25 }
 0x227   : > { %v1651_v26 = vpop.f32.mrf.mxu2 }
 0x228   : > { %v628_v8 = vadd.f32 %v1658_v36, %v1651_v26 }
 0x22a   : > { %v1292_v11 = vmul.f32 -1.442695, %v628_v8 }
 0x22f   : > { %v630_v27 = vpop.f32.mrf.mxu2 }
 0x230   : > { %v631_v53 = vadd.f32 %v1658_v36, %v630_v27 }
 0x232   : > { %v1293_v12 = vmul.f32 -1.442695, %v631_v53 }
 0x237   : > { %v633_v28 = vpop.f32.mrf.mxu2 }
 0x238   : > { %v634_v63 = vadd.f32 %v1658_v36, %v633_v28 }
 0x23a   : > { %v1294_v13 = vmul.f32 -1.442695, %v634_v63 }
 0x23f   : > { %v1653_v29 = vpop.f32.mrf.mxu2 }
 0x240   : > { %v637_v6 = vadd.f32 %v1658_v36, %v1653_v29 }
 0x242   : > { %v1295_v19 = vmul.f32 -1.442695, %v637_v6 }
 0x247   : > { %v639_v30 = vpop.f32.mrf.mxu2 }
 0x248   : > { %v1679_v46 = vadd.f32 %v1658_v36, %v639_v30 }
 0x24a   : > { %v1296_v21 = vmul.f32 -1.442695, %v1679_v46 }
 0x24f   : > { %v642_v31 = vpop.f32.mrf.mxu2 }
 0x250   : > { %v643_v57 = vadd.f32 %v1658_v36, %v642_v31 }
 0x252   : > { %v1297_v22 = vmul.f32 -1.442695, %v643_v57 }
 0x257   : > { %v645_v32 = vpop.f32.mrf.mxu2 }
 0x258   : > { %v646_v3 = vadd.f32 %v1658_v36, %v645_v32 }
 0x25a   : > { %v1298_v23 = vmul.f32 -1.442695, %v646_v3 }
 0x25f   : > { %v648_v33 = vpop.f32.mrf.mxu2 }
 0x260   : > { %v1670_v42 = vadd.f32 %v1658_v36, %v648_v33 }
 0x262   : > { %v1299_v24 = vmul.f32 -1.442695, %v1670_v42 }
 0x267   : > { %v651_v34 = vpop.f32.mrf.mxu2 }
 0x268   : > { %v1689_v51 = vadd.f32 %v1658_v36, %v651_v34 }
 0x26a   : > { %v1300_v25 = vmul.f32 -1.442695, %v1689_v51 }
 0x26f   : > { %v654_v35 = vpop.f32.mrf.mxu2 }
 0x270   : > { %v655_v0 = vadd.f32 %v1658_v36, %v654_v35 }
 0x272   : > { %v1301_v28 = vmul.f32 -1.442695, %v655_v0 }
 0x277   : > { %v657_v37 = vpop.f32.mrf.mxu2 }
 0x278   : > { %v1661_v38 = vadd.f32 %v1658_v36, %v657_v37 }
 0x27a   : > { %1345 = vtanh.f32 %v1661_v38  ;;  %v1302_v32 = vmul.f32 -1.442695, %v1661_v38 }
 0x27f   : > { %v660_v39 = vpop.f32.mrf.mxu2 }
 0x280   : > { %v1346_v40 = vpop.eup %1345  ;;  %v1665_v41 = vadd.f32 %v1658_v36, %v660_v39 }
 0x281   : > { %1047 = vrot.lane.b32.xlu2 %v1346_v40, %s1457_s12 }
 0x282   : > { %1347 = vtanh.f32 %v1665_v41 }
 0x283   : > { %1349 = vtanh.f32 %v1670_v42  ;;  %v1303_v42 = vmul.f32 -1.442695, %v1665_v41 }
 0x287   : > { %v663_v43 = vpop.f32.mrf.mxu2 }
 0x288   : > { %v1348_v44 = vpop.eup %1347  ;;  %v1673_v45 = vadd.f32 %v1658_v36, %v663_v43 }
 0x289   : > { %1049 = vrot.lane.b32.xlu2 %v1348_v44, %s1457_s12  ;;  %v1350_v47 = vpop.eup %1349 }
 0x28a   : > { %1351 = vtanh.f32 %v1673_v45 }
 0x28b   : > { %1353 = vtanh.f32 %v1679_v46 }
 0x28f   : > { %v666_v48 = vpop.f32.mrf.mxu2 }
 0x290   : > { %v1352_v49 = vpop.eup %1351  ;;  %v1682_v50 = vadd.f32 %v1658_v36, %v666_v48 }
 0x291   : > { %1051 = vrot.lane.b32.xlu1 %v1352_v49, %s1457_s12  ;;  %1041 = vrot.lane.b32.xlu2 %v1350_v47, %s1457_s12  ;;  %v1354_v52 = vpop.eup %1353 }
 0x292   : > { %1355 = vtanh.f32 %v1682_v50  ;;  %v1305_v34 = vmul.f32 -1.442695, %v1682_v50 }
 0x293   : > { %1357 = vtanh.f32 %v1689_v51 }
 0x297   : > { %v669_v54 = vpop.f32.mrf.mxu2 }
 0x298   : > { %v1356_v55 = vpop.eup %1355  ;;  %v1693_v56 = vadd.f32 %v1658_v36, %v669_v54 }
 0x299   : > { %1053 = vrot.lane.b32.xlu1 %v1356_v55, %s1457_s12  ;;  %1035 = vrot.lane.b32.xlu2 %v1354_v52, %s1457_s12  ;;  %v1358_v58 = vpop.eup %1357 }
 0x29a   : > { %1359 = vtanh.f32 %v1693_v56  ;;  %v1306_v30 = vmul.f32 -1.442695, %v1693_v56 }
 0x29b   : > { %1361 = vtanh.f32 %v631_v53 }
 0x29c   : > { %1363 = vtanh.f32 %v643_v57 }
 0x29f   : > { %v672_v59 = vpop.f32.mrf.mxu2 }
 0x2a0   : > { %v1360_v60 = vpop.eup %1359  ;;  %v673_v61 = vadd.f32 %v1658_v36, %v672_v59  ;;  %v1304_v36 = vmul.f32 -1.442695, %v1673_v45 }
 0x2a1   : > { %v1362_v62 = vpop.eup %1361  ;;  %1055 = vrot.lane.b32.xlu0 %v1360_v60, %s1457_s12  ;;  %1043 = vrot.lane.b32.xlu1 %v1358_v58, %s1457_s12 }
 0x2a2   : > { %1365 = vtanh.f32 %v673_v61  ;;  %1029 = vrot.lane.b32.xlu2 %v1362_v62, %s1457_s12  ;;  %v1364_v1 = vpop.eup %1363  ;;  %v1307_v26 = vmul.f32 -1.442695, %v673_v61 }
 0x2a3   : > { %1367 = vtanh.f32 %v634_v63 }
 0x2a4   : > { %1369 = vtanh.f32 %v655_v0 }
 0x2a5   : > { %1371 = vtanh.f32 %v646_v3 }
 0x2a6   : > { %1373 = vtanh.f32 %v637_v6 }
 0x2a7   : > { %1375 = vtanh.f32 %v628_v8 }
 0x2a8   : > { %v1366_v2 = vpop.eup %1365  ;;  %1377 = vpow2.f32 %v1292_v11 }
 0x2a9   : > { %1057 = vrot.lane.b32.xlu0 %v1366_v2, %s1457_s12  ;;  %1037 = vrot.lane.b32.xlu1 %v1364_v1, %s1457_s12  ;;  %v1368_v4 = vpop.eup %1367  ;;  %1379 = vpow2.f32 %v1293_v12 }
 0x2aa   : > { %v1370_v5 = vpop.eup %1369  ;;  %1381 = vpow2.f32 %v1294_v13 }
 0x2ab   : > { %v1372_v7 = vpop.eup %1371 }
 0x2ac   : > { %v1374_v9 = vpop.eup %1373 }
 0x2ad   : > { %v1376_v10 = vpop.eup %1375 }
 0x2ae   : > { %v1378_v14 = vpop.eup %1377 }
 0x2af   : > { %v1380_v15 = vpop.eup %1379  ;;  %v1718_v17 = vadd.f32 1.0, %v1378_v14 }
 0x2b0   : > { %v1382_v16 = vpop.eup %1381  ;;  %v1720_v18 = vadd.f32 1.0, %v1380_v15 }
 0x2b1   : > { %1045 = vrot.lane.b32.xlu0 %v1370_v5, %s1457_s12  ;;  %1031 = vrot.lane.b32.xlu1 %v1368_v4, %s1457_s12  ;;  %v1722_v20 = vadd.f32 1.0, %v1382_v16  ;;  %1383 = vrcp.f32 %v1718_v17 }
 0x2b2   : > { %1385 = vrcp.f32 %v1720_v18 }
 0x2b3   : > { %1387 = vpow2.f32 %v1295_v19 }
 0x2b4   : > { %1389 = vrcp.f32 %v1722_v20 }
 0x2b5   : > { %1391 = vpow2.f32 %v1296_v21 }
 0x2b6   : > { %1393 = vpow2.f32 %v1297_v22 }
 0x2b7   : > { %v1730_v27 = vpop.eup %1383  ;;  %1395 = vpow2.f32 %v1298_v23 }
 0x2b8   : > { %v1732_v29 = vpop.eup %1385  ;;  %1397 = vpow2.f32 %v1299_v24  ;;  %v740_v0 = vmul.f32 %v1730_v27, %v1718_v17 }
 0x2b9   : > { %1039 = vrot.lane.b32.xlu0 %v1372_v7, %s1457_s12  ;;  %v1388_v31 = vpop.eup %1387  ;;  %1399 = vpow2.f32 %v1300_v25  ;;  %v755_v4 = vmul.f32 %v1732_v29, %v1720_v18 }
 0x2ba   : > { %v1736_v33 = vpop.eup %1389  ;;  %1401 = vpow2.f32 %v1307_v26  ;;  %v1740_v39 = vadd.f32 1.0, %v1388_v31  ;;  %v741_v8 = vsub.f32 1.0, %v740_v0 }
 0x2bb   : > { %v1392_v35 = vpop.eup %1391  ;;  %1403 = vpow2.f32 %v1301_v28  ;;  %v770_v6 = vmul.f32 %v1736_v33, %v1722_v20  ;;  %v756_v12 = vsub.f32 1.0, %v755_v4 }
 0x2bc   : > { %v1394_v37 = vpop.eup %1393  ;;  %1405 = vpow2.f32 %v1306_v30  ;;  %v1743_v44 = vadd.f32 1.0, %v1392_v35  ;;  %v1817_v22 = vmul.f32 %v1730_v27, %v741_v8 }
 0x2bd   : > { %v1396_v40 = vpop.eup %1395  ;;  %1407 = vpow2.f32 %v1302_v32  ;;  %v1745_v46 = vadd.f32 1.0, %v1394_v37  ;;  %v771_v16 = vsub.f32 1.0, %v770_v6  ;;  %v1829_v31 = vmul.f32 %v1732_v29, %v756_v12 }
 0x2be   : > { %v1398_v43 = vpop.eup %1397  ;;  %1409 = vpow2.f32 %v1305_v34  ;;  %v1748_v45 = vadd.f32 1.0, %v1396_v40 }
 0x2bf   : > { %v1400_v38 = vpop.eup %1399  ;;  %1411 = vpow2.f32 %v1304_v36  ;;  %v1750_v49 = vadd.f32 1.0, %v1398_v43 }
 0x2c0   : > { %v1402_v47 = vpop.eup %1401  ;;  %1413 = vrcp.f32 %v1740_v39  ;;  %v1753_v41 = vadd.f32 1.0, %v1400_v38 }
 0x2c1   : > { %1033 = vrot.lane.b32.xlu0 %v1374_v9, %s1457_s12  ;;  %v1404_v48 = vpop.eup %1403  ;;  %1415 = vpow2.f32 %v1303_v42  ;;  %v1756_v52 = vadd.f32 1.0, %v1402_v47  ;;  %v1839_v42 = vmul.f32 %v1736_v33, %v771_v16 }
 0x2c2   : > { %v1406_v50 = vpop.eup %1405  ;;  %1417 = vrcp.f32 %v1743_v44  ;;  %v1759_v54 = vadd.f32 1.0, %v1404_v48  ;;  %vm864_vm1 = vweird.f32 %v1753_v41 }
 0x2c3   : > { %v1408_v51 = vpop.eup %1407  ;;  %1419 = vrcp.f32 %v1745_v46  ;;  %v1762_v56 = vadd.f32 1.0, %v1406_v50  ;;  %vm969_vm7 = vweird.f32 %v1756_v52 }
 0x2c4   : > { %v1410_v53 = vpop.eup %1409  ;;  %1421 = vrcp.f32 %v1748_v45  ;;  %v1767_v58 = vadd.f32 1.0, %v1408_v51 }
 0x2c5   : > { %v1412_v55 = vpop.eup %1411  ;;  %1423 = vrcp.f32 %v1750_v49  ;;  %v1769_v60 = vadd.f32 1.0, %v1410_v53  ;;  %vm954_vm12 = vweird.f32 %v1762_v56 }
 0x2c6   : > { %v1764_v57 = vpop.eup %1413  ;;  %1425 = vrcp.f32 %v1753_v41  ;;  %v1775_v62 = vadd.f32 1.0, %v1412_v55  ;;  %vm894_vm11 = vweird.f32 %v1767_v58 }
 0x2c7   : > { %v1416_v59 = vpop.eup %1415  ;;  %1427 = vrcp.f32 %v1756_v52  ;;  %vm939_vm15 = vweird.f32 %v1769_v60  ;;  %v945_v50 = vand.u32 2147483648, %v1769_v60 }
 0x2c8   : > { %v1772_v61 = vpop.eup %1417  ;;  %1429 = vrcp.f32 %v1759_v54  ;;  %v1785_v2 = vadd.f32 1.0, %v1416_v59 }
 0x2c9   : > { %1027 = vrot.lane.b32.xlu0 %v1376_v10, %s1457_s12  ;;  %v1777_v63 = vpop.eup %1419  ;;  %1431 = vrcp.f32 %v1762_v56  ;;  %v785_v10 = vmul.f32 %v1764_v57, %v1740_v39  ;;  %v800_v14 = vmul.f32 %v1772_v61, %v1743_v44 }
 0x2ca   : > { %v1782_v1 = vpop.eup %1421  ;;  %1433 = vrcp.f32 %v1767_v58  ;;  %v815_v21 = vmul.f32 %v1777_v63, %v1745_v46  ;;  %vm909_vm5 = vweird.f32 %v1785_v2 }
 0x2cb   : > { %v1787_v3 = vpop.eup %1423  ;;  %1435 = vrcp.f32 %v1769_v60  ;;  %v830_v26 = vmul.f32 %v1782_v1, %v1748_v45  ;;  %v786_v28 = vsub.f32 1.0, %v785_v10  ;;  %v801_v36 = vsub.f32 1.0, %v800_v14 }
 0x2cc   : > { %v1792_v5 = vpop.eup %1425  ;;  %1437 = vrcp.f32 %v1775_v62  ;;  %v845_v30 = vmul.f32 %v1787_v3, %v1750_v49  ;;  %v816_v47 = vsub.f32 1.0, %v815_v21 }
 0x2cd   : > { %v1797_v7 = vpop.eup %1427  ;;  %1439 = vrcp.f32 %v1785_v2  ;;  %v860_v32 = vmul.f32 %v1792_v5, %v1753_v41  ;;  %v831_v53 = vsub.f32 1.0, %v830_v26  ;;  %v1849_v55 = vmul.f32 %v1764_v57, %v786_v28 }
 0x2ce   : > { %v1799_v9 = vpop.eup %1429  ;;  %v965_v15 = vmul.f32 %v1797_v7, %v1756_v52  ;;  %v846_v0 = vsub.f32 1.0, %v845_v30  ;;  %v1857_v10 = vmul.f32 %v1772_v61, %v801_v36  ;;  %v1864_v26 = vmul.f32 %v1777_v63, %v816_v47 }
 0x2cf   : > { %v1804_v11 = vpop.eup %1431  ;;  %v875_v48 = vmul.f32 %v1799_v9, %v1759_v54  ;;  %v861_v6 = vsub.f32 1.0, %v860_v32  ;;  %v898_v47 = vand.u32 2147483647, %v1767_v58  ;;  %vm970_vm3 = vweird.f32 %v1797_v7 }
 0x2d0   : > { %v1806_v13 = vpop.eup %1433  ;;  %v950_v24 = vmul.f32 %v1804_v11, %v1762_v56  ;;  %v966_v40 = vsub.f32 1.0, %v965_v15  ;;  %v1873_v25 = vmul.f32 %v1787_v3, %v846_v0  ;;  %v975_v0 = vand.u32 2147483648, %v1756_v52  ;;  %vm1901_vm10 = vmor %vm969_vm7, %vm970_vm3 }
 0x2d1   : > { %v1812_v19 = vpop.eup %1435  ;;  %v890_v43 = vmul.f32 %v1806_v13, %v1767_v58  ;;  %v876_v28 = vsub.f32 1.0, %v875_v48  ;;  %vm895_vm4 = vweird.f32 %v1806_v13  ;;  %vm955_vm6 = vweird.f32 %v1804_v11 }
 0x2d2   : > { %v1819_v23 = vpop.eup %1437  ;;  %v935_v37 = vmul.f32 %v1812_v19, %v1769_v60  ;;  %v951_v51 = vsub.f32 1.0, %v950_v24  ;;  %v967_v14 = vmul.f32 %v1797_v7, %v966_v40  ;;  %vm940_vm9 = vweird.f32 %v1812_v19  ;;  %vm1920_vm0 = vmor %vm954_vm12, %vm955_vm6 }
 0x2d3   : > { %v1834_v35 = vpop.eup %1439  ;;  %v920_v38 = vmul.f32 %v1819_v23, %v1775_v62  ;;  %v891_v21 = vsub.f32 1.0, %v890_v43  ;;  %v1876_v43 = vmul.f32 %v1792_v5, %v861_v6  ;;  %v877_v34 = vmul.f32 %v1799_v9, %v876_v28 }
 0x2d4   : > { %v905_v59 = vmul.f32 %v1834_v35, %v1785_v2  ;;  %v936_v12 = vsub.f32 1.0, %v935_v37  ;;  %v952_v32 = vmul.f32 %v1804_v11, %v951_v51  ;;  %v1870_v37 = vmul.f32 %v1782_v1, %v831_v53 }
 0x2d5   : > { %v921_v24 = vsub.f32 1.0, %v920_v38  ;;  %v883_v38 = vand.u32 2147483647, %v1759_v54  ;;  %v968_v51 = vadd.f32 %v1797_v7, %v967_v14  ;;  %v892_v53 = vmul.f32 %v1806_v13, %v891_v21 }
 0x2d6   : > { %v906_v40 = vsub.f32 1.0, %v905_v59  ;;  %v937_v48 = vmul.f32 %v1812_v19, %v936_v12  ;;  %v953_v6 = vadd.f32 %v1804_v11, %v952_v32  ;;  %v973_v12 = vand.u32 2147483647, %v1756_v52 }
 0x2d7   : > { %v922_v59 = vmul.f32 %v1819_v23, %v921_v24  ;;  %vm910_vm8 = vweird.f32 %v1834_v35  ;;  %v960_v24 = vand.u32 2147483648, %v1762_v56  ;;  %v958_v32 = vand.u32 2147483647, %v1762_v56 }
 0x2d8   : > { %v907_v14 = vmul.f32 %v1834_v35, %v906_v40  ;;  %v938_v52 = vadd.f32 %v1812_v19, %v937_v48  ;;  %v972_v40 = vsel %vm1901_vm10, %v1797_v7, %v968_v51  ;;  %vm880_vm13 = vweird.f32 %v1799_v9  ;;  %vm1937_vm10 = vmor %vm939_vm15, %vm940_vm9 }
 0x2d9   : > { %vm925_vm14 = vweird.f32 %v1819_v23  ;;  %v976_v56 = vor.u32 1.1754944e-38, %v975_v0  ;;  %v923_v28 = vadd.f32 %v1819_v23, %v922_v59  ;;  %v943_v7 = vand.u32 2147483647, %v1769_v60 }
 0x2da   : > { %v957_v51 = vsel %vm1920_vm0, %v1804_v11, %v953_v6  ;;  %vm865_vm2 = vweird.f32 %v1792_v5  ;;  %vm974_vm3 = vcmp.eq.f32.partialorder %v973_v12, 8.507059e+37  ;;  %vm879_vm7 = vweird.f32 %v1759_v54 }
 0x2db   : > { %v1861_v16 = vpop.permute.xlu2 %1047  ;;  %vm924_vm6 = vweird.f32 %v1775_v62  ;;  %v930_v30 = vand.u32 2147483648, %v1775_v62  ;;  %v961_v60 = vor.u32 1.1754944e-38, %v960_v24  ;;  %v977_v0 = vsel %vm974_vm3, %v976_v56, %v972_v40 }
 0x2dc   : > { %v908_v11 = vadd.f32 %v1834_v35, %v907_v14  ;;  %vm850_vm12 = vweird.f32 %v1787_v3  ;;  %v928_v6 = vand.u32 2147483647, %v1775_v62  ;;  %v942_v12 = vsel %vm1937_vm10, %v1812_v19, %v938_v52  ;;  %vm1952_vm9 = vmor %vm924_vm6, %vm925_vm14 }
 0x2dd   : > { %vm959_vm0 = vcmp.eq.f32.partialorder %v958_v32, 8.507059e+37  ;;  %v913_v48 = vand.u32 2147483647, %v1785_v2  ;;  %v915_v36 = vand.u32 2147483648, %v1785_v2  ;;  %v946_v14 = vor.u32 1.1754944e-38, %v945_v50  ;;  %vm1967_vm14 = vmor %vm909_vm5, %vm910_vm8 }
 0x2de   : > { %v962_v40 = vsel %vm959_vm0, %v961_v60, %v957_v51  ;;  %v893_v62 = vadd.f32 %v1806_v13, %v892_v53  ;;  %vm849_vm15 = vweird.f32 %v1750_v49  ;;  %v927_v19 = vsel %vm1952_vm9, %v1819_v23, %v923_v28  ;;  %vm1981_vm5 = vmor %vm894_vm11, %vm895_vm4 }
 0x2df   : > { %vm944_vm3 = vcmp.eq.f32.partialorder %v943_v7, 8.507059e+37  ;;  %v1010_v52 = vsub.f32 1.0, %v977_v0  ;;  %vm835_vm10 = vweird.f32 %v1782_v1  ;;  %v900_v32 = vand.u32 2147483648, %v1767_v58  ;;  %vm2003_vm11 = vmor %vm879_vm7, %vm880_vm13 }
 0x2e0   : > { %v931_v53 = vor.u32 1.1754944e-38, %v930_v30  ;;  %v947_v56 = vsel %vm944_vm3, %v946_v14, %v942_v12  ;;  %v878_v59 = vadd.f32 %v1799_v9, %v877_v34  ;;  %v912_v23 = vsel %vm1967_vm14, %v1834_v35, %v908_v11  ;;  %vm2022_vm13 = vmor %vm864_vm1, %vm865_vm2 }
 0x2e1   : > { %vm929_vm6 = vcmp.eq.f32.partialorder %v928_v6, 8.507059e+37  ;;  %v1009_v28 = vsub.f32 1.0, %v962_v40  ;;  %vm820_vm0 = vweird.f32 %v1777_v63  ;;  %vm834_vm9 = vweird.f32 %v1748_v45 }
 0x2e2   : > { %v916_v34 = vor.u32 1.1754944e-38, %v915_v36  ;;  %v932_v30 = vsel %vm929_vm6, %v931_v53, %v927_v19  ;;  %v863_v35 = vadd.f32 %v1792_v5, %v1876_v43  ;;  %v885_v60 = vand.u32 2147483648, %v1759_v54 }
 0x2e3   : > { %v1931_v15 = vpop.permute.xlu2 %1049  ;;  %v897_v0 = vsel %vm1981_vm5, %v1806_v13, %v893_v62  ;;  %vm914_vm8 = vcmp.eq.f32.partialorder %v913_v48, 8.507059e+37  ;;  %vm805_vm3 = vweird.f32 %v1772_v61  ;;  %v1008_v11 = vsub.f32 1.0, %v947_v56 }
 0x2e4   : > { %vm819_vm4 = vweird.f32 %v1745_v46  ;;  %v901_v36 = vor.u32 1.1754944e-38, %v900_v32  ;;  %v917_v12 = vsel %vm914_vm8, %v916_v34, %v912_v23  ;;  %v848_v43 = vadd.f32 %v1787_v3, %v1873_v25  ;;  %vm2040_vm8 = vmor %vm849_vm15, %vm850_vm12 }
 0x2e5   : > { %v870_v14 = vand.u32 2147483648, %v1753_v41  ;;  %vm899_vm14 = vcmp.eq.f32.partialorder %v898_v47, 8.507059e+37  ;;  %vm804_vm6 = vweird.f32 %v1743_v44  ;;  %v882_v48 = vsel %vm2003_vm11, %v1799_v9, %v878_v59 }
 0x2e6   : > { %vm790_vm5 = vweird.f32 %v1764_v57  ;;  %v902_v40 = vsel %vm899_vm14, %v901_v36, %v897_v0  ;;  %v855_v19 = vand.u32 2147483648, %v1750_v49  ;;  %v833_v47 = vadd.f32 %v1782_v1, %v1870_v37  ;;  %vm2062_vm14 = vmor %vm834_vm9, %vm835_vm10 }
 0x2e7   : > { %v1006_v9 = vsub.f32 1.0, %v917_v12  ;;  %v867_v32 = vsel %vm2022_vm13, %v1792_v5, %v863_v35  ;;  %vm884_vm7 = vcmp.eq.f32.partialorder %v883_v38, 8.507059e+37  ;;  %vm775_vm1 = vweird.f32 %v1736_v33  ;;  %vm2078_vm10 = vmor %vm819_vm4, %vm820_vm0 }
 0x2e8   : > { %vm789_vm2 = vweird.f32 %v1740_v39  ;;  %v818_v5 = vadd.f32 %v1777_v63, %v1864_v26  ;;  %v840_v54 = vand.u32 2147483648, %v1748_v45  ;;  %v1005_v38 = vsub.f32 1.0, %v902_v40  ;;  %vm2093_vm0 = vmor %vm804_vm6, %vm805_vm3 }
 0x2e9   : > { %v1086_v56 = vmul.f32 %v1931_v15, %v1006_v9  ;;  %vm760_vm12 = vweird.f32 %v1732_v29  ;;  %v2225_v59 = vand.u32 2147483647, %v1753_v41  ;;  %vm774_vm11 = vweird.f32 %v1722_v20  ;;  %vm2113_vm4 = vmor %vm789_vm2, %vm790_vm5 }
 0x2ea   : > { %v856_v26 = vor.u32 1.1754944e-38, %v855_v19  ;;  %v803_v23 = vadd.f32 %v1772_v61, %v1857_v10  ;;  %v1085_v41 = vmul.f32 %v1861_v16, %v1005_v38  ;;  %v2228_v15 = vand.u32 2147483647, %v1750_v49  ;;  %vm2129_vm5 = vmor %vm774_vm11, %vm775_vm1 }
 0x2eb   : > { %v2015_v62 = vpop.permute.xlu2 %1041  ;;  %vm869_vm15 = vcmp.eq.f32.partialorder %v2225_v59, 8.507059e+37  ;;  %v837_v10 = vsel %vm2062_vm14, %v1782_v1, %v833_v47  ;;  %v841_v49 = vor.u32 1.1754944e-38, %v840_v54  ;;  %v788_v35 = vadd.f32 %v1764_v57, %v1849_v55 }
 0x2ec   : > { %vm854_vm13 = vcmp.eq.f32.partialorder %v2228_v15, 8.507059e+37  ;;  %v822_v1 = vsel %vm2078_vm10, %v1777_v63, %v818_v5  ;;  %v773_v12 = vadd.f32 %v1736_v33, %v1839_v42  ;;  %v795_v63 = vand.u32 2147483648, %v1740_v39 }
 0x2ed   : > { %v758_v40 = vadd.f32 %v1732_v29, %v1829_v31  ;;  %v780_v19 = vand.u32 2147483648, %v1722_v20  ;;  %v792_v31 = vsel %vm2113_vm4, %v1764_v57, %v788_v35  ;;  %v763_v9 = vand.u32 2147483647, %v1720_v18 }
 0x2ee   : > { %v777_v37 = vsel %vm2129_vm5, %v1736_v33, %v773_v12  ;;  %v743_v54 = vadd.f32 %v1730_v27, %v1817_v22  ;;  %vm745_vm1 = vweird.f32 %v1730_v27  ;;  %v750_v59 = vand.u32 2147483648, %v1718_v17 }
 0x2ef   : > { %vm764_vm11 = vcmp.eq.f32.partialorder %v763_v9, 8.507059e+37  ;;  %vm1163_vm10 = vcmask 130048  }
 0x303   : > { %v1853_v4 = vpop.permute.xlu1 %1051 }
 0x30b   : > { %v1916_v8 = vpop.permute.xlu1 %1053 }
 0x30c   : > { %v1088_v25 = vmul.f32 %v1916_v8, %v1008_v11  ;;  %v886_v8 = vor.u32 1.1754944e-38, %v885_v60  ;;  %v2231_v11 = vand.u32 2147483647, %v1748_v45  ;;  %v807_v45 = vsel %vm2093_vm0, %v1772_v61, %v803_v23 }
 0x30d   : > { %v748_v23 = vand.u32 2147483647, %v1718_v17 }
 0x30e   : > { %v887_v53 = vsel %vm884_vm7, %v886_v8, %v882_v48  ;;  %vm759_vm7 = vweird.f32 %v1720_v18  ;;  %vm839_vm9 = vcmp.eq.f32.partialorder %v2231_v11, 8.507059e+37  ;;  %v1119_v11 = vld [vmem:[%s2202_s6 + $0x8] sm:$0xff] }
 0x30f   : > { %v1004_v2 = vsub.f32 1.0, %v887_v53 }
 0x313   : > { %v1896_v21 = vpop.permute.xlu0 %1055  ;;  %v1996_v24 = vpop.permute.xlu1 %1043 }
 0x314   : > { %v1089_v6 = vmul.f32 %v1896_v21, %v1009_v28  ;;  %v1007_v21 = vsub.f32 1.0, %v932_v30  ;;  %v810_v30 = vand.u32 2147483648, %v1743_v44 }
 0x316   : > { %v811_v48 = vor.u32 1.1754944e-38, %v810_v30 }
 0x31b   : > { %v1058_v51 = vpop.permute.xlu0 %1057  ;;  %v1038_v36 = vpop.permute.xlu1 %1037 }
 0x31c   : > { %v1090_v7 = vmul.f32 %v1058_v51, %v1010_v52  ;;  %v1087_v52 = vmul.f32 %v1853_v4, %v1007_v21  ;;  %v871_v4 = vor.u32 1.1754944e-38, %v870_v14  ;;  %v852_v51 = vsel %vm2040_vm8, %v1787_v3, %v848_v43  ;;  %vm2142_vm8 = vmor %vm759_vm7, %vm760_vm12 }
 0x31d   : > { %v857_v34 = vsel %vm854_vm13, %v856_v26, %v852_v51  ;;  %v842_v43 = vsel %vm839_vm9, %v841_v49, %v837_v10  ;;  %v2234_v21 = vand.u32 2147483647, %v1745_v46  ;;  %vm744_vm12 = vweird.f32 %v1718_v17 }
 0x31e   : > { %1093 = vmatpush.msrb.mxu3 %v1090_v7  ;;  %v872_v28 = vsel %vm869_vm15, %v871_v4, %v867_v32  ;;  %v825_v7 = vand.u32 2147483648, %v1745_v46  ;;  %v1002_v14 = vsub.f32 1.0, %v857_v34  ;;  %v1001_v8 = vsub.f32 1.0, %v842_v43  ;;  %vm746_vm14 = vmor %vm744_vm12, %vm745_vm1 }
 0x31f   : > { %v1003_v60 = vsub.f32 1.0, %v872_v28  ;;  %vm824_vm3 = vcmp.eq.f32.partialorder %v2234_v21, 8.507059e+37  ;;  %v2240_v4 = vand.u32 2147483647, %v1740_v39  ;;  %v762_v39 = vsel %vm2142_vm8, %v1732_v29, %v758_v40 }
 0x320   : > { %1094 = vmatpush.msrb.mxu3 %v1089_v6  ;;  %v826_v55 = vor.u32 1.1754944e-38, %v825_v7  ;;  %v1082_v46 = vmul.f32 %v2015_v62, %v1002_v14  ;;  %vm749_vm13 = vcmp.eq.f32.partialorder %v748_v23, 8.507059e+37  ;;  %v1118_v6 = vld [vmem:[%s2202_s6] sm:$0xff]  ;;  %vm1126_vm7 = vcmask 261120  }
 0x321   : > { %v1083_v13 = vmul.f32 %v1996_v24, %v1003_v60  ;;  %v2237_v24 = vand.u32 2147483647, %v1743_v44  ;;  %v796_v44 = vor.u32 1.1754944e-38, %v795_v63  ;;  %vm794_vm2 = vcmp.eq.f32.partialorder %v2240_v4, 8.507059e+37  ;;  %v1091_v60 = vld [vmem:[%s2198_s2] sm:$0xff] }
 0x322   : > { %1095 = vmatpush.msrb.mxu3 %v1088_v25  ;;  %v1036_v25 = vpop.permute.xlu2 %1035  ;;  %v827_v42 = vsel %vm824_vm3, %v826_v55, %v822_v1  ;;  %v1120_v1 = vld [vmem:[%s2202_s6 + $0x10] sm:$0xff]  ;;  %v1344_v14 = vld [vmem:[%s2204_s8] ss:$0 sm:$0xff]  ;;  %vm2244_vm9 = vcmask 31744  }
 0x323   : > { %v1046_v50 = vpop.permute.xlu0 %1045  ;;  %vm809_vm6 = vcmp.eq.f32.partialorder %v2237_v24, 8.507059e+37  ;;  %v1000_v32 = vsub.f32 1.0, %v827_v42  ;;  %v797_v53 = vsel %vm794_vm2, %v796_v44, %v792_v31  ;;  %v1032_v7 = vpop.permute.xlu1 %1031  ;;  %1160 = vrot.lane.b32.xlu1 %v1344_v14, %s1458_s29  ;;  %vm2245_vm0 = vmmov %vm2244_vm9 }
 0x324   : > { %1096 = vmatpush.msrb.mxu3 %v1087_v52  ;;  %v1084_v0 = vmul.f32 %v1046_v50, %v1004_v2  ;;  %v812_v47 = vsel %vm809_vm6, %v811_v48, %v807_v45  ;;  %v765_v52 = vand.u32 2147483648, %v1720_v18  ;;  %v781_v50 = vor.u32 1.1754944e-38, %v780_v19  ;;  %v1158_v45 = vld [vmem:[%s2203_s7] sm:$0xff] }
 0x325   : > { %v999_v33 = vsub.f32 1.0, %v812_v47  ;;  %v1080_v38 = vmul.f32 %v1038_v36, %v1000_v32  ;;  %v998_v22 = vsub.f32 1.0, %v797_v53  ;;  %v751_v2 = vor.u32 1.1754944e-38, %v750_v59  ;;  %v1159_v36 = vld [vmem:[%s2203_s7 + $0x8] sm:$0xff] }
 0x326   : > { %1097 = vmatpush.msrb.mxu3 %v1086_v56  ;;  %v2243_v56 = vand.u32 2147483647, %v1722_v20  ;;  %v766_v18 = vor.u32 1.1754944e-38, %v765_v52 }
 0x327   : > { %v1079_v26 = vmul.f32 %v1036_v25, %v999_v33 }
 0x328   : > { %1098 = vmatpush.msrb.mxu3 %v1085_v41  ;;  %vm779_vm15 = vcmp.eq.f32.partialorder %v2243_v56, 8.507059e+37  ;;  %v767_v28 = vsel %vm764_vm11, %v766_v18, %v762_v39  ;;  %v747_v41 = vsel %vm746_vm14, %v1730_v27, %v743_v54  ;;  %v1121_v27 = vld [vmem:[%s2202_s6 + $0x18] sm:$0xff] }
 0x329   : > { %v782_v51 = vsel %vm779_vm15, %v781_v50, %v777_v37  ;;  %v996_v10 = vsub.f32 1.0, %v767_v28  ;;  %v752_v30 = vsel %vm749_vm13, %v751_v2, %v747_v41 }
 0x32a   : > { %1099 = vmatpush.msrb.mxu3 %v1084_v0  ;;  %v997_v20 = vsub.f32 1.0, %v782_v51  ;;  %v1030_v15 = vpop.permute.xlu2 %1029  ;;  %v995_v17 = vsub.f32 1.0, %v752_v30  ;;  %v1092_v0 = vld [vmem:[%s2198_s2 + $0x8] sm:$0xff] }
 0x32b   : > { %v1040_v58 = vpop.permute.xlu0 %1039  ;;  %v1076_v16 = vmul.f32 %v1030_v15, %v996_v10 }
 0x32c   : > { %1100 = vmatpush.msrb.mxu3 %v1083_v13  ;;  %v1081_v57 = vmul.f32 %v1040_v58, %v1001_v8  ;;  %v1077_v34 = vmul.f32 %v1032_v7, %v997_v20 }
 0x32e   : > { %1101 = vmatpush.msrb.mxu3 %v1082_v46 }
 0x330   : > { %1102 = vmatpush.msrb.mxu3 %v1081_v57 }
 0x332   : > { %1103 = vmatpush.msrb.mxu3 %v1080_v38 }
 0x333   : > { %v1034_v29 = vpop.permute.xlu0 %1033 }
 0x334   : > { %v1078_v3 = vmul.f32 %v1034_v29, %v998_v22  ;;  %1104 = vmatpush.msrb.mxu3 %v1079_v26 }
 0x336   : > { %1105 = vmatpush.msrb.mxu3 %v1078_v3 }
 0x338   : > { %1106 = vmatpush.msrb.mxu3 %v1077_v34 }
 0x33a   : > { %1107 = vmatpush.msrb.mxu3 %v1076_v16 }
 0x33b   : > { %v1028_v49 = vpop.permute.xlu0 %1027 }
 0x33c   : > { %v1075_v35 = vmul.f32 %v1028_v49, %v995_v17 }
 0x33e   : > { %1108 = vmatpush.msrb.mxu3 %v1075_v35 }
 0x33f   : > { %1109 = vmatmul.f32.vlgmr.msrb.gmra.mxu3 %v1091_v60 }
 0x340   : > { %1145 = vmatpush.msra.mxu3 %v1121_v27 }
 0x342   : > { %1146 = vmatpush.msra.mxu3 %v1120_v1 }
 0x344   : > { %1147 = vmatpush.msra.mxu3 %v1119_v11 }
 0x346   : > { %1148 = vmatpush.msra.mxu3 %v1118_v6 }
 0x347   : > { %1112 = vmatmul.f32.gmra.mxu3 %v1092_v0 }
 0x348   : > { %1184 = vmatpush.msrb.mxu3 %v1159_v36 }
 0x34a   : > { %1185 = vmatpush.msrb.mxu3 %v1158_v45 }
 0x395   : > { %v1161_v19 = vpop.permute.xlu1 %1160 }
 0x3c2   : > { %v1110_v55 = vpop.f32.mrf.mxu3 }
 0x3c3   : > { %1441 = vtanh.f32 %v1110_v55 }
 0x3c9   : > { %v1442_v12 = vpop.eup %1441 }
 0x3ca   : > { %v1113_v43 = vpop.f32.mrf.mxu3  ;;  %1308 = vmatmul.msk.f32.vlgmr.msra.gmra.mxu3 %vm1126_vm7, %v1442_v12 }
 0x3cb   : > { %1443 = vtanh.f32 %v1113_v43 }
 0x3d1   : > { %v1444_v63 = vpop.eup %1443 }
 0x3d2   : > { %1309 = vmatmul.msk.f32.gmra.mxu3 %vm1126_vm7, %v1444_v63 }
 0x44d   : > { %v1150_v13 = vpop.f32.mrf.mxu3 }
 0x44e   : > { %v1151_v21 = vadd.f32 %v1344_v14, %v1150_v13 }
 0x450   : > { %1445 = vtanh.f32 %v1151_v21 }
 0x455   : > { %v1153_v25 = vpop.f32.mrf.mxu3 }
 0x456   : > { %v1446_v48 = vpop.eup %1445  ;;  %v1154_v40 = vadd.f32 %v1344_v14, %v1153_v25 }
 0x457   : > { %1310 = vmatmul.msk.f32.vlgmr.msrb.gmra.mxu3 %vm1163_vm10, %v1446_v48 }
 0x458   : > { %1447 = vtanh.f32 %v1154_v40 }
 0x45e   : > { %v1448_v42 = vpop.eup %1447 }
 0x45f   : > { %1311 = vmatmul.msk.f32.gmra.mxu3 %vm1163_vm10, %v1448_v42 }
 0x4da   : > { %v1187_v58 = vpop.f32.mrf.mxu3 }
 0x4db   : > { %v1188_v61 = vadd.f32 %v1187_v58, %v1161_v19 }
 0x4dd   : > { %1193 = vst.msk [vmem:[%s332_s16] sm:$0xff] %vm2244_vm9, %v1188_v61 }
 0x4e2   : > { %v1190_v46 = vpop.f32.mrf.mxu3 }
 0x4e3   : > { %v1191_v24 = vadd.f32 %v1190_v46, %v1161_v19 }
 0x4e5   : > { %1194 = vst.msk [vmem:[%s332_s16 + $0x8] sm:$0xff] %vm2245_vm0, %v1191_v24 }
 0x4e6 PF: > { %s19_s30 = sadd.s32 1, %s1455_s30  }
 0x4e7   : > { %p16_p4 = scmp.ge.s32.totalorder %s19_s30, 4  }
 0x4e9   :  { %18 = sbr.rel (!%p16_p4) target bundleno = 1 (0x1), region = 86 }

</bundles_post_ra>
